<compile_context>
chip_gen: v5e
topology: v5e:2x2
jax: 0.10.0
libtpu: 0.0.40
codegen_flags: <defaults>
</compile_context>

<pallas_src>
import jax
import jax.numpy as jnp
from jax.experimental import pallas as pl
from jax.experimental.pallas import tpu as pltpu


def _round_up(a, b):
    return (a + b - 1) // b * b


def _patch_embed_kernel(x_ref, w_ref, b_ref, o_ref):
    # One MXU matmul per tile; bias added in f32, then cast to the output dtype.
    o_ref[...] = (
        jnp.dot(x_ref[...], w_ref[...], preferred_element_type=jnp.float32)
        + b_ref[...]
    ).astype(o_ref.dtype)


def battery_patch_embed(x, weight, bias, patch_size, *, compute_dtype=None):
    """x:      (B, L, C) with L = num_patches * patch_size
       weight: (embed_dim, features_num, patch_size)  (PyTorch Conv1d layout)
       bias:   (embed_dim,)
       compute_dtype: optional dtype (e.g. jnp.bfloat16) for the matmul operands
       returns (B, num_patches, embed_dim) in x.dtype."""
    B, L, C = x.shape
    E = weight.shape[0]
    assert L % patch_size == 0, "Input length must be num_patches * patch_size"
    P = L // patch_size

    out_dtype = x.dtype
    if compute_dtype is not None:
        x = x.astype(compute_dtype)
        weight = weight.astype(compute_dtype)

    # Flatten patches: (B, P*ps, C) is contiguous, so (B*P, ps*C) has the
    # column index k*C + c (k slow, c fast).
    xp = x.reshape(B * P, patch_size * C)
    # Weight (E, C, ps) -> (ps, C, E) -> (K, N) so the K index matches k*C + c.
    wf = jnp.transpose(weight, (2, 1, 0)).reshape(patch_size * C, E)
    bf = bias.astype(jnp.float32).reshape(1, E)

    M, K = xp.shape
    N = E

    # Tile sizes: cap tm (VMEM-safe + lets megacore split the M axis); keep K
    # whole (it is small: patch_size * features); force a lane-dense N tile by
    # padding E up to a multiple of 128.
    tm = min(512, _round_up(M, 8))
    M_pad = _round_up(M, tm)
    N_pad = _round_up(N, 128)
    tn = 512 if N_pad % 512 == 0 else (256 if N_pad % 256 == 0 else 128)

    if M_pad != M:
        xp = jnp.pad(xp, ((0, M_pad - M), (0, 0)))
    if N_pad != N:
        wf = jnp.pad(wf, ((0, 0), (0, N_pad - N)))
        bf = jnp.pad(bf, ((0, 0), (0, N_pad - N)))

    grid = (M_pad // tm, N_pad // tn)

    bytes_per = lambda a: a.size * a.dtype.itemsize
    cost = pl.CostEstimate(
        flops=2 * M * K * N,
        transcendentals=0,
        bytes_accessed=bytes_per(xp) + bytes_per(wf) + bytes_per(bf)
        + M * N * jnp.dtype(out_dtype).itemsize,
    )

    out = pl.pallas_call(
        _patch_embed_kernel,
        out_shape=jax.ShapeDtypeStruct((M_pad, N_pad), out_dtype),
        grid_spec=pltpu.PrefetchScalarGridSpec(
            num_scalar_prefetch=0,
            grid=grid,
            in_specs=[
                pl.BlockSpec((tm, K), lambda i, j: (i, 0)),
                pl.BlockSpec((K, tn), lambda i, j: (0, j)),
                pl.BlockSpec((1, tn), lambda i, j: (0, j)),
            ],
            out_specs=pl.BlockSpec((tm, tn), lambda i, j: (i, j)),
        ),
        compiler_params=pltpu.CompilerParams(
            dimension_semantics=("parallel", "parallel")
        ),
        cost_estimate=cost,
    )(xp, wf, bf)

    # Strip padding and restore (B, num_patches, embed_dim).
    return out[:M, :N].reshape(B, P, E)


if __name__ == "__main__":
    # Small shapes consistent with the module's forward contract
    # (embed_dim deliberately NOT a multiple of 128 to exercise the padded,
    # lane-dense output path).
    batch = 2
    tokens_len = 16      # num_patches
    patch_size = 4
    features_num = 8     # C
    embed_dim = 192      # E
    L = tokens_len * patch_size

    key = jax.random.PRNGKey(0)
    kx, kw, kb = jax.random.split(key, 3)

    x = jax.random.normal(kx, (batch, L, features_num), dtype=jnp.float32)
    # Synthetic parameters matching nn.Conv1d(features_num, embed_dim, patch_size)
    weight = jax.random.normal(
        kw, (embed_dim, features_num, patch_size), dtype=jnp.float32
    ) * 0.02
    bias = jax.random.normal(kb, (embed_dim,), dtype=jnp.float32) * 0.02

    out = battery_patch_embed(x, weight, bias, patch_size)
    out = jax.block_until_ready(out)

    # Reference check (plain JAX): out[b,p,e] = sum_{k,c} x[b,p*ps+k,c] * W[e,c,k] + b[e]
    xr = x.reshape(batch, tokens_len, patch_size, features_num)
    ref = jnp.einsum("bpkc,eck->bpe", xr, weight) + bias[None, None, :]
    assert out.shape == (batch, tokens_len, embed_dim)
    assert jnp.allclose(out, ref, atol=1e-4, rtol=1e-4)

    print("KERNEL_OK")
</pallas_src>

<mosaic_0001>
module attributes {stable_mosaic.version = 11 : i64} {
  func.func @_patch_embed_kernel(%arg0: i32, %arg1: i32, %arg2: memref<32x32xf32, #tpu.memory_space<vmem>>, %arg3: memref<32x256xf32, #tpu.memory_space<vmem>>, %arg4: memref<1x256xf32, #tpu.memory_space<vmem>>, %arg5: memref<32x256xf32, #tpu.memory_space<vmem>>) attributes {dimension_semantics = [#tpu.dimension_semantics<parallel>, #tpu.dimension_semantics<parallel>], iteration_bounds = array<i64: 1, 1>, scalar_prefetch = 0 : i64, scratch_operands = 0 : i64, tpu.core_type = #tpu.core_type<tc>, window_params = [{transform_indices = @transform_0, window_bounds = array<i64: 32, 32>}, {transform_indices = @transform_1, window_bounds = array<i64: 32, 256>}, {transform_indices = @transform_2, window_bounds = array<i64: 1, 256>}, {transform_indices = @transform_3, window_bounds = array<i64: 32, 256>}]} {
    %c0 = arith.constant 0 : index
    %c0_0 = arith.constant 0 : index
    %0 = vector.load %arg2[%c0, %c0_0] : memref<32x32xf32, #tpu.memory_space<vmem>>, vector<32x32xf32>
    %c0_1 = arith.constant 0 : index
    %c0_2 = arith.constant 0 : index
    %1 = vector.load %arg3[%c0_1, %c0_2] : memref<32x256xf32, #tpu.memory_space<vmem>>, vector<32x256xf32>
    %cst = arith.constant dense<0.000000e+00> : vector<32x256xf32>
    %2 = tpu.matmul %0, %1, %cst {dimension_numbers = #tpu.dot_dimension_numbers<[1], [0], [0], [1], [0, 0, 1, 1], [], []>} : vector<32x32xf32>, vector<32x256xf32>, vector<32x256xf32> -> vector<32x256xf32>
    %c0_3 = arith.constant 0 : index
    %c0_4 = arith.constant 0 : index
    %3 = vector.load %arg4[%c0_3, %c0_4] : memref<1x256xf32, #tpu.memory_space<vmem>>, vector<1x256xf32>
    %4 = vector.broadcast %3 : vector<1x256xf32> to vector<32x256xf32>
    %5 = arith.addf %2, %4 : vector<32x256xf32>
    %c0_5 = arith.constant 0 : index
    %c0_6 = arith.constant 0 : index
    %6 = vector.load %arg5[%c0_5, %c0_6] : memref<32x256xf32, #tpu.memory_space<vmem>>, vector<32x256xf32>
    tpu.vector_store %arg5[%c0_5, %c0_6], %5 {strides = array<i32>} : memref<32x256xf32, #tpu.memory_space<vmem>>, vector<32x256xf32>,
    return
  }
  func.func @transform_0(%arg0: i32, %arg1: i32) -> (i32, i32) {
    %c0_i32 = arith.constant 0 : i32
    %c0_i32_0 = arith.constant 0 : i32
    return %arg0, %c0_i32 : i32, i32
  }
  func.func @transform_1(%arg0: i32, %arg1: i32) -> (i32, i32) {
    %c0_i32 = arith.constant 0 : i32
    %c0_i32_0 = arith.constant 0 : i32
    return %c0_i32, %arg1 : i32, i32
  }
  func.func @transform_2(%arg0: i32, %arg1: i32) -> (i32, i32) {
    %c0_i32 = arith.constant 0 : i32
    %c0_i32_0 = arith.constant 0 : i32
    return %c0_i32, %arg1 : i32, i32
  }
  func.func @transform_3(%arg0: i32, %arg1: i32) -> (i32, i32) {
    %c0_i32 = arith.constant 0 : i32
    return %arg0, %arg1 : i32, i32
  }
}

</mosaic_0001>

<bundles_post_ra>
// kernel: tpu_custom_call.1
= control target key start
LH: loop header
LB: loop body
LE: loop exit
PB: predicated region body
PF: predicated region fallthrough
CT: control target
= control target key end

     0   :  { %8 = vsyncpa [#allocation3], 0  ;;  %s357_s0 = inlined_call_operand.hbm [shape: f32[32,32], index: 0, kind: input, shape index: {}]   ;;  %s358_s1 = inlined_call_operand.hbm [shape: f32[32,256], index: 1, kind: input, shape index: {}]   ;;  %s359_s2 = inlined_call_operand.hbm [shape: f32[1,256], index: 2, kind: input, shape index: {}]   ;;  %s360_s3 = inlined_call_operand.hbm [shape: f32[32,256], index: 3, kind: output, shape index: {}]  }
   0x1   :  { %9 = vsyncpa [#allocation6], 0  ;;  %s28_s14 = sshll.u32 %s358_s1, 4  ;;  %s29_s14 = int_to_ptr.hbm [resolvable:$true] %s28_s14 }
   0x2   :  { %10 = vsyncpa [#allocation4], 0  ;;  %s303_s15 = smov [#allocation5]   ;;  %s15_s19 = sshll.u32 %s357_s0, 4  ;;  %s16_s19 = int_to_ptr.hbm [resolvable:$true] %s15_s19 }
   0x3   :  { %s30_s16 = sshll.u32 %s303_s15, 4  ;;  %s304_s20 = smov 256   ;;  %s31_s16 = int_to_ptr.vmem [resolvable:$true] %s30_s16 }
   0x4   :  { %s305_s21 = smov 16   ;;  %s306_s22 = smov [#allocation2]  }
   0x5   :  { %36 = dma.hbm_to_vmem [thread:$0]  %s29_s14, 1024, %s31_s16, [#allocation6], %s304_s20, %s304_s20, %s305_s21  }
   0x6   :  { %s17_s23 = sshll.u32 %s306_s22, 4  ;;  %s307_s1 = smov 128   ;;  %s18_s23 = int_to_ptr.vmem [resolvable:$true] %s17_s23 }
   0x7   :  { %s308_s24 = smov 8   ;;  %s42_s27 = sshll.u32 %s359_s2, 4  ;;  %s43_s27 = int_to_ptr.hbm [resolvable:$true] %s42_s27 }
   0x8   :  { %23 = dma.hbm_to_vmem [thread:$0]  %s16_s19, 512, %s18_s23, [#allocation3], %s307_s1, %s307_s1, %s308_s24  }
   0x9   :  { %s309_s28 = smov [#allocation7]  }
   0xa   :  { %s44_s0 = sshll.u32 %s309_s28, 4  ;;  %s45_s0 = int_to_ptr.vmem [resolvable:$true] %s44_s0 }
   0xb   :  { %47 = dma.hbm_to_vmem [thread:$0]  %s43_s27, 32, %s45_s0, [#allocation6]  }
   0xc   :  { %297 = dma.done.wait [#allocation3], 512  }
   0xd   :  { %298 = vsyncadd [#allocation3], 4294966784 }
   0xe   :  { %299 = dma.done.wait [#allocation6], 1056  }
   0xf   :  { %300 = vsyncadd [#allocation6], 4294966240  ;;  %v70_v0 = vld [vmem:[#allocation5 + $0x30] sm:$0xff]  ;;  %v71_v1 = vld [vmem:[#allocation5 + $0x38] sm:$0xff]  ;;  %vm78_vm0 = vcmask 261120   ;;  %s310_s2 = smov [#allocation8]  }
  0x10   :  { %v68_v2 = vld [vmem:[#allocation5 + $0x20] sm:$0xff]  ;;  %185 = vmatpush.msra.mxu2 %v70_v0  ;;  %189 = vmatpush.msra.mxu3 %v71_v1  ;;  %v69_v3 = vld [vmem:[#allocation5 + $0x28] sm:$0xff]  ;;  %v66_v4 = vld [vmem:[#allocation5 + $0x10] sm:$0xff]  ;;  %s161_s29 = sshll.u32 %s310_s2, 4  ;;  %s163_s5 = sshll.u32 %s360_s3, 4  ;;  %s162_s29 = int_to_ptr.vmem [resolvable:$true] %s161_s29  ;;  %s164_s5 = int_to_ptr.hbm [resolvable:$true] %s163_s5 }
  0x11   :  { %v67_v5 = vld [vmem:[#allocation5 + $0x18] sm:$0xff]  ;;  %103 = vmatpush.msra.mxu0 %v70_v0  ;;  %132 = vmatpush.msra.mxu1 %v71_v1  ;;  %v64_v6 = vld [vmem:[#allocation5] sm:$0xff]  ;;  %v65_v7 = vld [vmem:[#allocation5 + $0x8] sm:$0xff] }
  0x12   :  { %186 = vmatpush.msra.mxu2 %v68_v2  ;;  %190 = vmatpush.msra.mxu3 %v69_v3  ;;  %v62_v8 = vld [vmem:[#allocation2 + $0x10] sm:$0xff]  ;;  %v60_v9 = vld [vmem:[#allocation2] sm:$0xff]  ;;  %v63_v10 = vld [vmem:[#allocation2 + $0x18] sm:$0xff] }
  0x13   :  { %104 = vmatpush.msra.mxu0 %v68_v2  ;;  %133 = vmatpush.msra.mxu1 %v69_v3  ;;  %v61_v11 = vld [vmem:[#allocation2 + $0x8] sm:$0xff]  ;;  %v72_v12 = vld [vmem:[#allocation7] sm:$0x3] }
  0x14   :  { %187 = vmatpush.msra.mxu2 %v66_v4  ;;  %191 = vmatpush.msra.mxu3 %v67_v5  ;;  %v74_v13 = vperm.slane %v72_v12, 0  ;;  %v75_v14 = vperm.slane %v72_v12, 1 }
  0x15   :  { %105 = vmatpush.msra.mxu0 %v66_v4  ;;  %134 = vmatpush.msra.mxu1 %v67_v5 }
  0x16   :  { %188 = vmatpush.msra.mxu2 %v64_v6  ;;  %192 = vmatpush.msra.mxu3 %v65_v7 }
  0x17   :  { %179 = vmatmul.msk.f32.vlgmr.msra.gmra.mxu2 %vm78_vm0, %v62_v8  ;;  %183 = vmatmul.msk.f32.vlgmr.msra.gmra.mxu3 %vm78_vm0, %v62_v8 }
  0x18   :  { %106 = vmatpush.msra.mxu0 %v64_v6  ;;  %135 = vmatpush.msra.mxu1 %v65_v7 }
  0x19   :  { %177 = vmatmul.msk.f32.vlgmr.msra.gmra.mxu0 %vm78_vm0, %v60_v9  ;;  %181 = vmatmul.msk.f32.vlgmr.msra.gmra.mxu1 %vm78_vm0, %v60_v9 }
  0x1f   :  { %180 = vmatmul.msk.f32.gmra.mxu2 %vm78_vm0, %v63_v10  ;;  %184 = vmatmul.msk.f32.gmra.mxu3 %vm78_vm0, %v63_v10 }
  0x21   :  { %178 = vmatmul.msk.f32.gmra.mxu0 %vm78_vm0, %v61_v11  ;;  %182 = vmatmul.msk.f32.gmra.mxu1 %vm78_vm0, %v61_v11 }
  0x96   :  { %v108_v15 = vpop.f32.mrf.mxu0  ;;  %v137_v16 = vpop.f32.mrf.mxu1 }
  0x97   :  { %v109_v17 = vadd.f32 %v108_v15, %v74_v13  ;;  %v138_v18 = vadd.f32 %v137_v16, %v75_v14 }
  0x99   :  { %149 = vst [vmem:[#allocation8] sm:$0xff] %v109_v17 }
  0x9a   :  { %v114_v19 = vpop.f32.mrf.mxu2  ;;  %150 = vst [vmem:[#allocation8 + $0x8] sm:$0xff] %v138_v18  ;;  %v143_v20 = vpop.f32.mrf.mxu3 }
  0x9b   :  { %v115_v21 = vadd.f32 %v114_v19, %v74_v13  ;;  %v144_v22 = vadd.f32 %v143_v20, %v75_v14 }
  0x9d   :  { %153 = vst [vmem:[#allocation8 + $0x20] sm:$0xff] %v115_v21 }
  0x9e   :  { %154 = vst [vmem:[#allocation8 + $0x28] sm:$0xff] %v144_v22  ;;  %v111_v23 = vpop.f32.mrf.mxu0  ;;  %v140_v24 = vpop.f32.mrf.mxu1 }
  0x9f   :  { %v112_v25 = vadd.f32 %v111_v23, %v74_v13  ;;  %v141_v26 = vadd.f32 %v140_v24, %v75_v14 }
  0xa1   :  { %151 = vst [vmem:[#allocation8 + $0x10] sm:$0xff] %v112_v25 }
  0xa2   :  { %v117_v27 = vpop.f32.mrf.mxu2  ;;  %152 = vst [vmem:[#allocation8 + $0x18] sm:$0xff] %v141_v26  ;;  %v146_v28 = vpop.f32.mrf.mxu3 }
  0xa3   :  { %v118_v29 = vadd.f32 %v117_v27, %v74_v13  ;;  %v147_v30 = vadd.f32 %v146_v28, %v75_v14 }
  0xa5   :  { %155 = vst [vmem:[#allocation8 + $0x30] sm:$0xff] %v118_v29 }
  0xa6   :  { %156 = vst [vmem:[#allocation8 + $0x38] sm:$0xff] %v147_v30 }
  0xa7   :  { %169 = dma.vmem_to_hbm [thread:$0]  %s162_s29, 1024, %s164_s5, [#allocation4], %s304_s20, %s304_s20, %s305_s21  }
  0xa8   :  { %301 = dma.done.wait [#allocation4], 1024  }
  0xa9   :  { %302 = vsyncadd [#allocation4], 4294966272 }
  0xaa   :  { %174 = vsyncpa [#allocation3], 1 }
  0xab   :  { %175 = vsyncpa [#allocation6], 1 }
  0xac   :  { %176 = vsyncpa [#allocation4], 1 }

</bundles_post_ra>
